<compile_context>
chip_gen: v6e
topology: v6e:2x2x1
jax: 0.10.0
libtpu: 0.0.40
codegen_flags: <defaults>
</compile_context>

<pallas_src>
import math

import jax
import jax.numpy as jnp
from jax.experimental import pallas as pl
from jax.experimental.pallas import tpu as pltpu


def _round_up(x, m):
    return (x + m - 1) // m * m


def _conv2d_kernel(x_ref, w_ref, b_ref, o_ref):
    # x_ref: (1, K_pad, S)   bf16  im2col'd activations (K = C_in*KH*KW on sublanes)
    # w_ref: (1, TCO, K_pad) bf16  weights for one C_out tile, taps folded into K
    # b_ref: (1, TCO, 1)     f32
    # o_ref: (1, TCO, S)     f32   NCHW-flattened output rows for this tile/band
    acc = jnp.dot(w_ref[0], x_ref[0], preferred_element_type=jnp.float32)
    o_ref[0] = (acc + b_ref[0]).astype(o_ref.dtype)


def norm_conv2d(x, weight, bias, *, stride=1, padding=0, dilation=1, norm="none"):
    """NormConv2d.forward with the default norm='none' (Identity norm).

    x:      (B, C_in, H, W) float32 (NCHW, like PyTorch)
    weight: (C_out, C_in, KH, KW) float32
    bias:   (C_out,) float32
    returns (B, C_out, H_out, W_out) float32
    """
    # TODO(synk): norms other than 'none' (weight_norm/spectral_norm only
    # reparametrize `weight` before calling this; layer/group norm would need a
    # second normalization kernel over the conv output).
    assert norm == "none"
    if isinstance(stride, int):
        stride = (stride, stride)
    if isinstance(padding, int):
        padding = (padding, padding)
    if isinstance(dilation, int):
        dilation = (dilation, dilation)
    # TODO(synk): groups > 1 not supported.
    sh, sw = stride
    ph, pw = padding
    dh, dw = dilation

    B, C_in, H, W = x.shape
    C_out, C_in_w, KH, KW = weight.shape
    assert C_in_w == C_in

    Hp, Wp = H + 2 * ph, W + 2 * pw
    H_out = (Hp - dh * (KH - 1) - 1) // sh + 1
    W_out = (Wp - dw * (KW - 1) - 1) // sw + 1
    assert H_out > 0 and W_out > 0
    T = KH * KW

    # ---- tiling parameters ------------------------------------------------
    K = C_in * T                                    # taps folded into contraction
    K_pad = _round_up(K, 16)                        # bf16 sublane-tile aligned
    TCO = 128 if C_out > 128 else _round_up(C_out, 16)
    n_co = pl.cdiv(C_out, TCO)
    C_out_pad = n_co * TCO

    W_out_p = _round_up(W_out, 8)                   # sublane/lane friendly
    # spatial row band: keep blocks a few MiB so everything fits v7x VMEM and
    # still gives a lane-dense (multiple-of-128) flattened spatial extent.
    target_lanes = max(1024, (8192 * 128) // max(K_pad, 128))
    band = max(16, (target_lanes // W_out_p) // 16 * 16)
    band = min(band, _round_up(H_out, 16))          # band is a multiple of 16
    H_out_p = _round_up(H_out, band)
    n_hb = H_out_p // band
    S_band = band * W_out_p                         # multiple of 128
    S_tot = H_out_p * W_out_p

    # ---- im2col (stays channels-first, no NCHW<->NHWC transpose) ----------
    x_p = x
    if ph or pw:
        x_p = jnp.pad(x, ((0, 0), (0, 0), (ph, ph), (pw, pw)))
    patches = [
        x_p[:, :,
            kh * dh: kh * dh + sh * (H_out - 1) + 1: sh,
            kw * dw: kw * dw + sw * (W_out - 1) + 1: sw]
        for kh in range(KH) for kw in range(KW)
    ]
    x_col = jnp.concatenate(patches, axis=1)        # (B, T*C_in, H_out, W_out)
    x_col = jnp.pad(x_col, ((0, 0), (0, K_pad - K),
                            (0, H_out_p - H_out), (0, W_out_p - W_out)))
    x_col = x_col.astype(jnp.bfloat16).reshape(B, K_pad, S_tot)

    # ---- weights / bias: (C_out, C_in, KH, KW) -> (n_co, TCO, K_pad) ------
    w = jnp.transpose(weight, (0, 2, 3, 1)).reshape(C_out, K)   # k = (kh,kw,c)
    w = jnp.pad(w, ((0, C_out_pad - C_out), (0, K_pad - K)))
    w = w.reshape(n_co, TCO, K_pad).astype(jnp.bfloat16)

    b = jnp.pad(bias.astype(jnp.float32), (0, C_out_pad - C_out))
    b = b.reshape(n_co, TCO, 1)

    # ---- VMEM budget: double-buffered blocks, clamped to [32, 64] MiB -----
    blk_bytes = 2 * (K_pad * S_band * 2 + TCO * S_band * 4 + TCO * (K_pad * 2 + 4))
    vmem_limit = int(min(64 * 2**20, max(32 * 2**20, 2 * blk_bytes)))

    # NOTE: allow_input_fusion could additionally fuse the im2col/pad/cast
    # producers into the pallas_call inputs; left off to keep lowering simple.
    out = pl.pallas_call(
        _conv2d_kernel,
        grid=(B, n_hb, n_co),            # co fastest: x block reused across co
        in_specs=[
            pl.BlockSpec((1, K_pad, S_band), lambda bb, hb, co: (bb, 0, hb)),
            pl.BlockSpec((1, TCO, K_pad), lambda bb, hb, co: (co, 0, 0)),
            pl.BlockSpec((1, TCO, 1), lambda bb, hb, co: (co, 0, 0)),
        ],
        out_specs=pl.BlockSpec((1, TCO, S_band), lambda bb, hb, co: (bb, co, hb)),
        out_shape=jax.ShapeDtypeStruct((B, C_out_pad, S_tot), jnp.float32),
        compiler_params=pltpu.CompilerParams(
            dimension_semantics=("parallel", "parallel", "parallel"),
            vmem_limit_bytes=vmem_limit),
    )(x_col, w, b)

    # Output is already NCHW: split the flattened spatial dim and strip pads.
    y = out.reshape(B, C_out_pad, H_out_p, W_out_p)
    return y[:, :C_out, :H_out, :W_out]


def _reference(x, weight, bias, stride=(1, 1), padding=(0, 0)):
    """Plain-JAX reference for nn.Conv2d + Identity norm."""
    y = jax.lax.conv_general_dilated(
        x, weight, window_strides=stride,
        padding=((padding[0], padding[0]), (padding[1], padding[1])),
        dimension_numbers=("NCHW", "OIHW", "NCHW"))
    return y + bias[None, :, None, None]


if __name__ == "__main__":
    # NormConv2d(in_channels=4, out_channels=8, kernel_size=3) on a 16x16 image.
    B, C_in, C_out, KH, KW, H, W = 2, 4, 8, 3, 3, 16, 16

    key = jax.random.PRNGKey(0)
    kx, kwt, kb = jax.random.split(key, 3)
    x = jax.random.normal(kx, (B, C_in, H, W), dtype=jnp.float32)
    fan_in = C_in * KH * KW
    bound = 1.0 / math.sqrt(fan_in)
    weight = jax.random.uniform(kwt, (C_out, C_in, KH, KW), jnp.float32, -bound, bound)
    bias = jax.random.uniform(kb, (C_out,), jnp.float32, -bound, bound)

    # Default config: stride=1, padding=0, norm='none'.
    y = jax.block_until_ready(norm_conv2d(x, weight, bias))
    y_ref = _reference(x, weight, bias)
    assert y.shape == y_ref.shape, (y.shape, y_ref.shape)
    # bf16 inputs with f32 accumulation -> loosened tolerance vs the f32 reference.
    assert jnp.allclose(y, y_ref, atol=3e-2, rtol=3e-2), \
        float(jnp.max(jnp.abs(y - y_ref)))

    # Second config: padding=1, stride=2 (exercises conv-pad + strided patches).
    y2 = jax.block_until_ready(norm_conv2d(x, weight, bias, stride=2, padding=1))
    y2_ref = _reference(x, weight, bias, stride=(2, 2), padding=(1, 1))
    assert y2.shape == y2_ref.shape, (y2.shape, y2_ref.shape)
    assert jnp.allclose(y2, y2_ref, atol=3e-2, rtol=3e-2), \
        float(jnp.max(jnp.abs(y2 - y2_ref)))

    print("KERNEL_OK")
</pallas_src>

<mosaic_0001>
module attributes {stable_mosaic.version = 11 : i64} {
  func.func @_conv2d_kernel(%arg0: i32, %arg1: i32, %arg2: i32, %arg3: memref<1x48x256xbf16, #tpu.memory_space<vmem>>, %arg4: memref<1x16x48xbf16, #tpu.memory_space<vmem>>, %arg5: memref<1x16x1xf32, #tpu.memory_space<vmem>>, %arg6: memref<1x16x256xf32, #tpu.memory_space<vmem>>) attributes {dimension_semantics = [#tpu.dimension_semantics<parallel>, #tpu.dimension_semantics<parallel>, #tpu.dimension_semantics<parallel>], iteration_bounds = array<i64: 2, 1, 1>, scalar_prefetch = 0 : i64, scratch_operands = 0 : i64, tpu.core_type = #tpu.core_type<tc>, window_params = [{transform_indices = @transform_0, window_bounds = array<i64: 1, 48, 256>}, {transform_indices = @transform_1, window_bounds = array<i64: 1, 16, 48>}, {transform_indices = @transform_2, window_bounds = array<i64: 1, 16, 1>}, {transform_indices = @transform_3, window_bounds = array<i64: 1, 16, 256>}]} {
    %c0 = arith.constant 0 : index
    %c0_0 = arith.constant 0 : index
    %c0_1 = arith.constant 0 : index
    %0 = vector.load %arg4[%c0, %c0_0, %c0_1] : memref<1x16x48xbf16, #tpu.memory_space<vmem>>, vector<1x16x48xbf16>
    %1 = vector.shape_cast %0 : vector<1x16x48xbf16> to vector<16x48xbf16>
    %c0_2 = arith.constant 0 : index
    %c0_3 = arith.constant 0 : index
    %c0_4 = arith.constant 0 : index
    %2 = vector.load %arg3[%c0_2, %c0_3, %c0_4] : memref<1x48x256xbf16, #tpu.memory_space<vmem>>, vector<1x48x256xbf16>
    %3 = vector.shape_cast %2 : vector<1x48x256xbf16> to vector<48x256xbf16>
    %cst = arith.constant dense<0.000000e+00> : vector<16x256xf32>
    %4 = tpu.matmul %1, %3, %cst {dimension_numbers = #tpu.dot_dimension_numbers<[1], [0], [0], [1], [0, 0, 1, 1], [], []>} : vector<16x48xbf16>, vector<48x256xbf16>, vector<16x256xf32> -> vector<16x256xf32>
    %c0_5 = arith.constant 0 : index
    %c0_6 = arith.constant 0 : index
    %c0_7 = arith.constant 0 : index
    %5 = vector.load %arg5[%c0_5, %c0_6, %c0_7] : memref<1x16x1xf32, #tpu.memory_space<vmem>>, vector<1x16x1xf32>
    %6 = vector.shape_cast %5 : vector<1x16x1xf32> to vector<16x1xf32>
    %7 = vector.broadcast %6 : vector<16x1xf32> to vector<16x256xf32>
    %8 = arith.addf %4, %7 : vector<16x256xf32>
    %c0_8 = arith.constant 0 : index
    %c0_9 = arith.constant 0 : index
    %c0_10 = arith.constant 0 : index
    %9 = vector.load %arg6[%c0_8, %c0_9, %c0_10] : memref<1x16x256xf32, #tpu.memory_space<vmem>>, vector<1x16x256xf32>
    %10 = vector.shape_cast %9 : vector<1x16x256xf32> to vector<16x256xf32>
    %11 = vector.shape_cast %8 : vector<16x256xf32> to vector<1x16x256xf32>
    tpu.vector_store %arg6[%c0_8, %c0_9, %c0_10], %11 {strides = array<i32>} : memref<1x16x256xf32, #tpu.memory_space<vmem>>, vector<1x16x256xf32>,
    return
  }
  func.func @transform_0(%arg0: i32, %arg1: i32, %arg2: i32) -> (i32, i32, i32) {
    %c0_i32 = arith.constant 0 : i32
    %c0_i32_0 = arith.constant 0 : i32
    return %arg0, %c0_i32, %arg1 : i32, i32, i32
  }
  func.func @transform_1(%arg0: i32, %arg1: i32, %arg2: i32) -> (i32, i32, i32) {
    %c0_i32 = arith.constant 0 : i32
    %c0_i32_0 = arith.constant 0 : i32
    %c0_i32_1 = arith.constant 0 : i32
    return %arg2, %c0_i32, %c0_i32_0 : i32, i32, i32
  }
  func.func @transform_2(%arg0: i32, %arg1: i32, %arg2: i32) -> (i32, i32, i32) {
    %c0_i32 = arith.constant 0 : i32
    %c0_i32_0 = arith.constant 0 : i32
    %c0_i32_1 = arith.constant 0 : i32
    return %arg2, %c0_i32, %c0_i32_0 : i32, i32, i32
  }
  func.func @transform_3(%arg0: i32, %arg1: i32, %arg2: i32) -> (i32, i32, i32) {
    %c0_i32 = arith.constant 0 : i32
    return %arg0, %arg2, %arg1 : i32, i32, i32
  }
}

</mosaic_0001>

<bundles_post_ra>
// kernel: tpu_custom_call.1
= control target key start
LH: loop header
LB: loop body
LE: loop exit
PB: predicated region body
PF: predicated region fallthrough
CT: control target
= control target key end

     0   :  { %8 = vsyncpa [#allocation3], 0  ;;  %s904_s0 = inlined_call_operand.hbm [shape: bf16[2,48,256], index: 0, kind: input, shape index: {}]   ;;  %s905_s1 = inlined_call_operand.vmem [shape: bf16[1,16,48], index: 1, kind: input, shape index: {}]   ;;  %s906_s2 = inlined_call_operand.vmem [shape: f32[1,16,1], index: 2, kind: input, shape index: {}]   ;;  %s907_s3 = inlined_call_operand.hbm [shape: f32[2,16,256], index: 3, kind: output, shape index: {}]  }
   0x1   :  { %10 = vsyncpa [#allocation3 + $0x1], 0 }
   0x2   :  { %11 = vsyncpa [#allocation4], 0 }
   0x3   :  { %13 = vsyncpa [#allocation4 + $0x1], 0  ;;  %s748_s12 = smov 0   ;;  %s750_s13 = smov 0  }
   0x4   :  { %s752_s14 = smov 0   ;;  %s754_s15 = smov 0  }
   0x5   :  { %s756_s16 = smov 0   ;;  %s758_s17 = smov 0  }
   0x6 LB: > { %s507_s18 = sadd.s32 4294967295, %s719_s17   ;;  %s508_s19 = sadd.s32 4294967294, %s719_s17   ;;  %s719_s17 = sphi %s758_s17, %s19_s17   ;;  %s715_s16 = sphi %s756_s16, %s918_s16   ;;  %s711_s15 = sphi %s754_s15, %s917_s15   ;;  %s707_s14 = sphi %s752_s14, %s916_s14   ;;  %s703_s13 = sphi %s750_s13, %s915_s13   ;;  %s699_s12 = sphi %s748_s12, %s914_s12  }
   0x7   : > { %s38_s20 = sadd.s32 1, %s715_s16  ;;  %s47_s21 = sadd.s32 1, %s707_s14 }
   0x8   : > { %p40_p0 = scmp.ge.s32.totalorder %s38_s20, 2  ;;  %p54_p1 = scmp.ne.s32.totalorder %s707_s14, %s703_s13 }
   0x9   : > { %p55_p2 = scmp.eq.s32.totalorder %s719_s17, 0  ;;  %p60_p3 = scmp.ne.s32.totalorder %s703_s13, %s699_s12 }
   0xa   : > { %s920_s20 = smov (%p40_p0, %s38_s20), 0  ;;  %p61_p5 = scmp.eq.s32.totalorder %s507_s18, 0 }
   0xb   : > { %p789_p4 = por %p55_p2, %p54_p1  ;;  %s42_s23 = ssub.s32 %s715_s16, %s920_s20 }
   0xc   : > { %p140_p6 = scmp.eq.s32.totalorder %s507_s18, 1  ;;  %p45_p7 = scmp.eq.s32.totalorder %s42_s23, 0 }
   0xd   : > { %p795_p8 = por %p61_p5, %p60_p3  ;;  %p146_p10 = scmp.eq.s32.totalorder %s508_s19, 1 }
   0xe   : > { %p799_p9 = por %p140_p6, %p54_p1  ;;  %p545_p13 = scmp.lt.s32.totalorder %s719_s17, 2 }
   0xf   : > { %s804_s26 = scalar_select %p45_p7, %s707_s14, %s47_s21  }
  0x10   : > { %p806_p11 = por %p146_p10, %p60_p3  ;;  %s182_s28 = sand.u32 1, %s707_s14  }
  0x11   : > { %s530_s29 = smul.u32 48, %s182_s28  ;;  %p816_p0 = pnand %p545_p13, %p789_p4 }
  0x12   : > { %s531_s30 = smul.u32 768, %s715_s16  ;;  %p514_p1 = scmp.ge.s32.totalorder %s719_s17, 1 }
  0x13   : > { %s186_s8 = scalar_lea.vmem [#allocation2], %s530_s29  ;;  %s183_s10 = scalar_lea.sflag [#allocation3], %s182_s28 }
  0x14   : > { %s194_s7 = scalar_lea.hbm %s904_s0, %s531_s30  ;;  %s195_s9 = sshll.u32 %s186_s8, 4  ;;  %s196_s9 = int_to_ptr.vmem [resolvable:$true] %s195_s9 }
  0x15   : > { %p613_p2 = pneg %p816_p0  ;;  %s624_s11 = scalar_lea.vmem %s196_s9, 768 }
  0x16   : > { %p625_p3 = scmp.ne.s32.totalorder %s196_s9, %s624_s11  ;;  %s721_s18 = smov [#allocation2]  }
  0x17   : > { %s629_s19 = sshll.u32 %s721_s18, 4  ;;  %s630_s19 = int_to_ptr.vmem [resolvable:$false] %s629_s19 }
  0x18   : > { %p627_p5 = pnand %p625_p3, %p613_p2  ;;  %s631_s21 = scalar_lea.vmem %s630_s19, 1536 }
  0x19   : > { %p632_p4 = scmp.lt.s32.totalorder %s196_s9, %s630_s19  ;;  %p633_p7 = scmp.lt.s32.totalorder %s631_s21, %s624_s11 }
  0x1a   : > { %p628_p6 = pneg %p627_p5 }
  0x1b   : > { %p634_p10 = por %p633_p7, %p632_p4 }
  0x1d   : > { %p635_p13 = pnand %p634_p10, %p628_p6 }
  0x1f   : > { %638 = shalt.err (!%p635_p13)
}
  0x20   : > { %s722_s22 = smov 128   ;;  %s723_s23 = smov 8  }
  0x21   : > { %540 = dma.hbm_to_vmem [thread:$0]  (!%p816_p0), %s194_s7, 768, %s196_s9, %s183_s10, %s722_s22, %s722_s22, %s723_s23  }
  0x22   : > { %p203_p12 = scmp.lt.s32.totalorder %s719_s17, 3 }
  0x24   : > { %p204_p2 = pnand %p514_p1, %p203_p12 }
  0x25   : > { %s832_s28 = sand.u32 (!%p204_p2), 1, %s703_s13  }
  0x26   : > { %207 = sbr.rel (%p204_p2) target bundleno = 273 (0x111), region = 32  ;;  %s210_s30 = scalar_lea.sflag (!%p204_p2), [#allocation3], %s832_s28 }
  0x27   : > { %s532_s29 = smul.u32 (!%p204_p2), 48, %s832_s28 }
  0x29   : > { %s213_s5 = scalar_lea.vmem (!%p204_p2), [#allocation2], %s532_s29 }
  0x2b   : > { %690 = dma.done.wait (%p795_p8), %s210_s30, 768  }
  0x2c   : > { %692 = vsyncadd (%p795_p8), %s210_s30, 4294966528  ;;  %v724_v0 = vmov 0   ;;  %v601_v1 = vld [vmem:[%s213_s5 + $0x24] ss:$8 sps:$4 sm:$0xff]   ;;  %v603_v2 = vld [vmem:[%s213_s5 + $0x20] ss:$8 sps:$4 sm:$0xff]  }
  0x2d   : > { %351 = vmatprep.mubr.bf16.mxu0 %v724_v0  ;;  %600 = vset.pattern.permute.xlu0 %v724_v0  ;;  %v604_v3 = vld [vmem:[%s213_s5 + $0x14] ss:$8 sps:$4 sm:$0xff]   ;;  %v606_v4 = vld [vmem:[%s213_s5 + $0x10] ss:$8 sps:$4 sm:$0xff]   ;;  %v607_v5 = vld [vmem:[%s213_s5 + $0x4] ss:$8 sps:$4 sm:$0xff]  }
  0x2e   : > { %329 = vmatprep.subr.bf16.mxu0 %v601_v1  ;;  %v268_v6 = vld [vmem:[%s906_s2] sm:$0xff]  ;;  %v269_v8 = vld [vmem:[%s906_s2 + $0x8] sm:$0xff]  ;;  %vm315_vm0 = vcmask 392192   ;;  %s515_s10 = sshll.u32 %s832_s28, 5  ;;  %s529_s19 = sshll.u32 %s711_s15, 9 }
  0x2f   : > { %330 = vmatpush1.bf16.msra.mxu0 %v603_v2  ;;  %272 = vperm.xlu0 %600, %v268_v6   ;;  %v609_v7 = vld [vmem:[%s213_s5] ss:$8 sps:$4 sm:$0xff]   ;;  %s245_s11 = scalar_lea.vmem [#allocation5], %s515_s10  ;;  %s856_s23 = scalar_lea.hbm %s907_s3, %s529_s19 }
  0x30   : > { %331 = vmatprep.subr.bf16.mxu0 %v604_v3  ;;  %v610_v9 = vld [vmem:[%s905_s1] sm:$0xff]   ;;  %s385_s18 = sshll.u32 %s245_s11, 4  ;;  %s367_s29 = scalar_lea.sflag [#allocation4], %s832_s28  ;;  %s851_s18 = int_to_ptr.vmem [resolvable:$true] %s385_s18 }
  0x31   : > { %s639_s15 = scalar_lea.vmem %s851_s18, 512  ;;  %s725_s30 = smov [#allocation5]  }
  0x32   : > { %p640_p8 = scmp.ne.s32.totalorder %s851_s18, %s639_s15  ;;  %s643_s5 = sshll.u32 %s725_s30, 4  ;;  %s644_s5 = int_to_ptr.vmem [resolvable:$false] %s643_s5 }
  0x33   : > { %332 = vmatpush1.bf16.msra.mxu0 %v606_v4  ;;  %277 = vperm.xlu0 %600, %v269_v8   ;;  %s645_s4 = scalar_lea.vmem %s644_s5, 1024  ;;  %p646_p1 = scmp.lt.s32.totalorder %s851_s18, %s644_s5 }
  0x34   : > { %333 = vmatprep.subr.bf16.mxu0 %v607_v5  ;;  %p641_p12 = pnand %p640_p8, %p799_p9  ;;  %p647_p3 = scmp.lt.s32.totalorder %s645_s4, %s639_s15 }
  0x36   : > { %p642_p0 = pneg %p641_p12  ;;  %p648_p5 = por %p647_p3, %p646_p1 }
  0x37   : > { %334 = vmatpush1.bf16.msra.mxu0 %v609_v7 }
  0x38   : > { %p649_p6 = pnand %p648_p5, %p642_p0 }
  0x3a   : > { %523 = vmatmul.mubr.msk.bf16.vlgmr.msra.gmra.mxu0 %vm315_vm0, %v610_v9 }
  0xaa   : > { %v273_v10 = vpop.permute.xlu0 %272 }
  0xae   : > { %v278_v15 = vpop.permute.xlu0 %277 }
  0xfa   : > { %v353_v11 = vpop.f32.mrf.mxu0 }
  0xfb   : > { %v354_v12 = vadd.f32 %v353_v11, %v273_v10 }
  0xfc   : > { %v355_v13 = vpop.f32.mrf.mxu0 }
  0xfd   : > { %362 = vst [vmem:[%s245_s11] sm:$0xff] %v354_v12  ;;  %v356_v14 = vadd.f32 %v355_v13, %v273_v10 }
  0xfe   : > { %v357_v16 = vpop.f32.mrf.mxu0 }
  0xff   : > { %363 = vst [vmem:[%s245_s11 + $0x8] sm:$0xff] %v356_v14  ;;  %v358_v17 = vadd.f32 %v357_v16, %v278_v15 }
 0x100   : > { %v359_v18 = vpop.f32.mrf.mxu0 }
 0x101   : > { %364 = vst [vmem:[%s245_s11 + $0x10] sm:$0xff] %v358_v17  ;;  %v360_v19 = vadd.f32 %v359_v18, %v278_v15 }
 0x103   : > { %365 = vst [vmem:[%s245_s11 + $0x18] sm:$0xff] %v360_v19 }
 0x104   : > { %652 = shalt.err (!%p649_p6)
}
 0x105   : > { %s653_s6 = scalar_lea.hbm %s856_s23, 512  ;;  %s657_s8 = scalar_lea.hbm %s907_s3, 1024 }
 0x106   : > { %p654_p4 = scmp.ne.s32.totalorder %s856_s23, %s653_s6  ;;  %p658_p13 = scmp.lt.s32.totalorder %s856_s23, %s907_s3 }
 0x107   : > { %p659_p2 = scmp.lt.s32.totalorder %s657_s8, %s653_s6 }
 0x108   : > { %p655_p7 = pnand %p654_p4, %p799_p9 }
 0x109   : > { %p660_p8 = por %p659_p2, %p658_p13 }
 0x10a   : > { %p656_p10 = pneg %p655_p7 }
 0x10c   : > { %p661_p12 = pnand %p660_p8, %p656_p10 }
 0x10e   : > { %664 = shalt.err (!%p661_p12)
}
 0x10f   : > { %s726_s11 = smov 256   ;;  %s727_s19 = smov 16  }
 0x110   : > { %535 = dma.vmem_to_hbm [thread:$0]  (%p799_p9), %s851_s18, 512, %s856_s23, %s367_s29, %s726_s11, %s726_s11, %s727_s19  }
 0x111 PF: > { %s400_s21 = sand.u32 1, %s699_s12   ;;  %p913_p0 = scmp.ge.s32.totalorder %s719_s17, 2 }
 0x112   : > { %s401_s22 = scalar_lea.sflag [#allocation4], %s400_s21 }
 0x113   : > { %p542_p1 = pnand %p913_p0, %p806_p11 }
 0x115   : > { %p543_p3 = pneg %p542_p1 }
 0x117   : > { %694 = dma.done.wait (%p543_p3), %s401_s22, 512  }
 0x118   : > { %696 = vsyncadd (%p543_p3), %s401_s22, 4294966784  ;;  %s19_s17 = sadd.s32 1, %s719_s17   ;;  %s914_s12 = smov %s703_s13 }
 0x119   : > { %p16_p5 = scmp.ge.s32.totalorder %s19_s17, 4   ;;  %s915_s13 = smov %s707_s14 }
 0x11a   : > { %s916_s14 = smov %s804_s26  ;;  %s917_s15 = smov %s715_s16 }
 0x11b   : > { %s918_s16 = smov %s920_s20  ;;  %18 = sbr.rel (!%p16_p5) target bundleno = 6 (0x6), region = 83 }
 0x120   :  { %406 = vsyncpa [#allocation3], 1 }
 0x121   :  { %408 = vsyncpa [#allocation3 + $0x1], 1 }
 0x122   :  { %409 = vsyncpa [#allocation4], 1 }
 0x123   :  { %411 = vsyncpa [#allocation4 + $0x1], 1 }

</bundles_post_ra>
